<compile_context>
chip_gen: v7x
topology: tpu7x:2x2x1
jax: 0.10.0
libtpu: 0.0.40
codegen_flags: <defaults>
</compile_context>

<pallas_src>
import functools

import jax
import jax.numpy as jnp
from jax import lax
from jax.experimental import pallas as pl
from jax.experimental.pallas import tpu as pltpu

LANES = 128
CHUNK_BASE = 512                       # in-kernel chunk rows (multiple of 32)
TARGET_BLOCK_BYTES = 8 * 1024 * 1024   # ~8 MiB per input per grid step
VMEM_CAP_BYTES = 48 * 1024 * 1024      # stay well under v7x's 64 MiB per-TC VMEM


def _sublane_pack(dtype) -> int:
    itemsize = jnp.dtype(dtype).itemsize
    if itemsize >= 4:
        return 8
    if itemsize == 2:
        return 16
    return 32


def _round_up(x: int, m: int) -> int:
    return ((x + m - 1) // m) * m


def _detect_num_cores() -> int:
    """Use 2 only where a second TensorCore sits behind one Pallas device."""
    try:
        info = pltpu.get_tpu_info()
        for attr in ("num_cores", "cores_per_chip", "num_tensorcores",
                     "tensorcore_count"):
            val = getattr(info, attr, None)
            if isinstance(val, int) and val > 0:
                return max(1, min(2, val))
    except Exception:
        pass
    try:
        kind = jax.devices()[0].device_kind.lower()
        if any(tag in kind for tag in ("v4", "v5p", "v7")):
            return 2
    except Exception:
        pass
    return 1  # single-TC v5e / v6e (safe default)


def _mse_partial_kernel(x_ref, t_ref, out_ref, acc_ref, *,
                        row_tile, chunk_rows, valid_rows, inv_total,
                        needs_mask):
    """Grid = (num_cores, steps); acc_ref is a single-vreg (8, 128) f32 acc."""
    s = pl.program_id(1)
    steps = pl.num_programs(1)

    @pl.when(s == 0)
    def _init():
        acc_ref[...] = jnp.zeros_like(acc_ref)

    block_row0 = (pl.program_id(0) * steps + s) * row_tile
    nchunks = row_tile // chunk_rows

    if needs_mask:
        # Hoisted: JAX does not CSE broadcast_in_dim, keep it out of the loop.
        sub_iota = lax.broadcasted_iota(jnp.int32, (chunk_rows, LANES), 0)

    def chunk_body(c, carry):
        r0 = pl.multiple_of(c * chunk_rows, chunk_rows)
        xc = x_ref[pl.ds(r0, chunk_rows), :].astype(jnp.float32)
        tc = t_ref[pl.ds(r0, chunk_rows), :].astype(jnp.float32)
        d = xc - tc
        dd = d * d
        if needs_mask:
            # Ragged tail: rows at/after `valid_rows` hold whatever garbage the
            # partial DMA left in VMEM -> select them to 0 before accumulating.
            row_ids = block_row0 + r0 + sub_iota
            dd = jnp.where(row_ids < valid_rows, dd, 0.0)
        # Fold into the single-vreg accumulator: the reshape keeps the (8,128)
        # tiling (free) and the axis-0 sum is pure cross-vreg VALU adds.
        acc_ref[...] += jnp.sum(dd.reshape(chunk_rows // 8, 8, LANES), axis=0)
        return carry

    lax.fori_loop(0, nchunks, chunk_body, 0, unroll=nchunks <= 4)

    @pl.when(s == steps - 1)
    def _finalize():
        # One XLU sublane reduce per core, lane-dense (1, 128) output block.
        # The cross-lane / cross-core sum happens in the wrapper on a tiny
        # (1, num_cores*128) array.
        out_ref[...] = (jnp.sum(acc_ref[...], axis=0, keepdims=True)
                        * jnp.float32(inv_total))


def content_loss(x, target):
    """Returns (input_passthrough, mse_loss_scalar) — ContentLoss_new forward+loss."""
    assert x.shape == target.shape, "input/target shape mismatch"
    total = int(x.size)
    itemsize = max(jnp.dtype(x.dtype).itemsize, jnp.dtype(target.dtype).itemsize)
    pack = max(_sublane_pack(x.dtype), _sublane_pack(target.dtype))

    # ---- present both operands as (rows, 128) views --------------------------
    # For numel % 128 == 0 (all realistic conv feature maps) these reshapes are
    # free bitcasts -> no extra HBM traffic.
    xf = x.reshape(-1)
    tf = target.reshape(-1)
    rows, rem = divmod(total, LANES)
    if rem:
        # TODO(synk): rare non-lane-aligned numel path; this pad copies both
        # inputs. Zero padding contributes 0 to the squared-diff sum.
        pad = LANES - rem
        xf = jnp.pad(xf, (0, pad))
        tf = jnp.pad(tf, (0, pad))
        rows += 1
    x2 = xf.reshape(rows, LANES)
    t2 = tf.reshape(rows, LANES)

    # ---- tiling: big DMA blocks, chunked accumulation in-kernel --------------
    num_cores = _detect_num_cores()

    def _tile(nc):
        rows_per_core = pl.cdiv(rows, nc)
        if rows_per_core <= CHUNK_BASE:
            rt = _round_up(rows_per_core, pack)
            ck = rt
        else:
            max_rows = max(CHUNK_BASE,
                           (TARGET_BLOCK_BYTES // (LANES * itemsize))
                           // CHUNK_BASE * CHUNK_BASE)
            rt = min(max_rows, _round_up(rows_per_core, CHUNK_BASE))
            ck = CHUNK_BASE
        st = pl.cdiv(rows, nc * rt)
        return rt, ck, st

    row_tile, chunk_rows, steps = _tile(num_cores)
    if num_cores > 1 and (num_cores * steps - 1) * row_tile >= rows:
        # A whole block would start past the array; drop to one core so every
        # block start stays in bounds (only the last block may be ragged).
        num_cores = 1
        row_tile, chunk_rows, steps = _tile(num_cores)

    needs_mask = (num_cores * steps * row_tile) != rows

    kernel = functools.partial(
        _mse_partial_kernel,
        row_tile=row_tile, chunk_rows=chunk_rows, valid_rows=rows,
        inv_total=1.0 / float(total), needs_mask=needs_mask)

    block_bytes = row_tile * LANES * itemsize
    # 2 inputs x 2 pipeline buffers x block + small acc/intermediates headroom.
    vmem_limit = int(min(VMEM_CAP_BYTES,
                         max(16 * 1024 * 1024, 4 * block_bytes + (6 << 20))))

    in_index_map = lambda p, s, S=steps: (p * S + s, 0)

    partials = pl.pallas_call(
        kernel,
        out_shape=jax.ShapeDtypeStruct((1, num_cores * LANES), jnp.float32),
        grid_spec=pltpu.PrefetchScalarGridSpec(
            num_scalar_prefetch=0,
            grid=(num_cores, steps),
            in_specs=[
                pl.BlockSpec((row_tile, LANES), in_index_map),
                pl.BlockSpec((row_tile, LANES), in_index_map),
            ],
            out_specs=pl.BlockSpec((1, LANES), lambda p, s: (0, p)),
            scratch_shapes=[pltpu.VMEM((8, LANES), jnp.float32)],
        ),
        compiler_params=pltpu.CompilerParams(
            dimension_semantics=("parallel", "arbitrary"),
            vmem_limit_bytes=vmem_limit,
        ),
        cost_estimate=pl.CostEstimate(
            flops=3 * total,
            bytes_accessed=2 * total * itemsize + num_cores * LANES * 4,
            transcendentals=0,
        ),
    )(x2, t2)

    loss = jnp.sum(partials)        # per-lane, per-core partials -> scalar MSE
    # forward() returns the input unchanged; the MSE is the side value.
    # TODO(synk): the nn.Module's stateful self.targetFeature buffer has no
    # Pallas equivalent; the target is passed explicitly instead.
    return x, loss


if __name__ == "__main__":
    # Small NCHW activation-like shapes, deterministic.
    key = jax.random.PRNGKey(0)
    k_in, k_tgt = jax.random.split(key)
    shape = (2, 4, 16, 16)  # N, C, H, W

    x = jax.random.normal(k_in, shape, dtype=jnp.float32)
    target = jax.random.normal(k_tgt, shape, dtype=jnp.float32)

    out, loss = content_loss(x, target)
    out = jax.block_until_ready(out)
    loss = jax.block_until_ready(loss)

    # Reference check (plain JAX) — mean over all elements, like F.mse_loss.
    ref_loss = jnp.mean((x - target) ** 2)
    assert jnp.allclose(loss, ref_loss, rtol=1e-5, atol=1e-6), (loss, ref_loss)
    assert jnp.array_equal(out, x)

    print("KERNEL_OK")
</pallas_src>

<mosaic_0001>
module attributes {stable_mosaic.version = 11 : i64} {
  func.func @_mse_partial_kernel(%arg0: i32, %arg1: i32, %arg2: memref<16x128xf32, #tpu.memory_space<vmem>>, %arg3: memref<16x128xf32, #tpu.memory_space<vmem>>, %arg4: memref<1x128xf32, #tpu.memory_space<vmem>>, %arg5: memref<8x128xf32, #tpu.memory_space<vmem>>) attributes {dimension_semantics = [#tpu.dimension_semantics<parallel>, #tpu.dimension_semantics<arbitrary>], iteration_bounds = array<i64: 1, 1>, scalar_prefetch = 0 : i64, scratch_operands = 1 : i64, tpu.core_type = #tpu.core_type<tc>, window_params = [{transform_indices = @transform_0, window_bounds = array<i64: 16, 128>}, {transform_indices = @transform_1, window_bounds = array<i64: 16, 128>}, {transform_indices = @transform_2, window_bounds = array<i64: 1, 128>}]} {
    %c0_i32 = arith.constant 0 : i32
    %0 = arith.cmpi eq, %arg1, %c0_i32 : i32
    %1 = arith.extui %0 : i1 to i32
    %c0_i32_0 = arith.constant 0 : i32
    %2 = arith.cmpi ne, %1, %c0_i32_0 : i32
    scf.if %2 {
      %cst_9 = arith.constant 0.000000e+00 : f32
      %19 = vector.broadcast %cst_9 : f32 to vector<8x128xf32>
      %c0_10 = arith.constant 0 : index
      %c0_11 = arith.constant 0 : index
      %20 = vector.load %arg5[%c0_10, %c0_11] : memref<8x128xf32, #tpu.memory_space<vmem>>, vector<8x128xf32>
      tpu.vector_store %arg5[%c0_10, %c0_11], %19 {strides = array<i32>} : memref<8x128xf32, #tpu.memory_space<vmem>>, vector<8x128xf32>,
    } else {
    }
    %c0_i32_1 = arith.constant 0 : i32
    %c16_i32 = arith.constant 16 : i32
    %3 = arith.muli %c0_i32_1, %c16_i32 : i32
    %4 = tpu.assume_multiple %3, 16 : i32
    %5 = arith.index_cast %4 : i32 to index
    %c0 = arith.constant 0 : index
    %6 = vector.load %arg2[%5, %c0] : memref<16x128xf32, #tpu.memory_space<vmem>>, vector<16x128xf32>
    %7 = arith.index_cast %4 : i32 to index
    %c0_2 = arith.constant 0 : index
    %8 = vector.load %arg3[%7, %c0_2] : memref<16x128xf32, #tpu.memory_space<vmem>>, vector<16x128xf32>
    %9 = arith.subf %6, %8 : vector<16x128xf32>
    %10 = arith.mulf %9, %9 : vector<16x128xf32>
    %c0_3 = arith.constant 0 : index
    %c0_4 = arith.constant 0 : index
    %11 = vector.load %arg5[%c0_3, %c0_4] : memref<8x128xf32, #tpu.memory_space<vmem>>, vector<8x128xf32>
    %12 = vector.shape_cast %10 : vector<16x128xf32> to vector<2x8x128xf32>
    %cst = arith.constant dense<0.000000e+00> : vector<8x128xf32>
    %13 = vector.multi_reduction <add>, %12, %cst [0] : vector<2x8x128xf32> to vector<8x128xf32>
    %14 = arith.addf %11, %13 : vector<8x128xf32>
    %c0_5 = arith.constant 0 : index
    %c0_6 = arith.constant 0 : index
    %15 = vector.load %arg5[%c0_5, %c0_6] : memref<8x128xf32, #tpu.memory_space<vmem>>, vector<8x128xf32>
    tpu.vector_store %arg5[%c0_5, %c0_6], %14 {strides = array<i32>} : memref<8x128xf32, #tpu.memory_space<vmem>>, vector<8x128xf32>,
    %c1_i32 = arith.constant 1 : i32
    %c0_i32_7 = arith.constant 0 : i32
    %16 = arith.cmpi eq, %arg1, %c0_i32_7 : i32
    %17 = arith.extui %16 : i1 to i32
    %c0_i32_8 = arith.constant 0 : i32
    %18 = arith.cmpi ne, %17, %c0_i32_8 : i32
    scf.if %18 {
      %c0_9 = arith.constant 0 : index
      %c0_10 = arith.constant 0 : index
      %19 = vector.load %arg5[%c0_9, %c0_10] : memref<8x128xf32, #tpu.memory_space<vmem>>, vector<8x128xf32>
      %cst_11 = arith.constant dense<0.000000e+00> : vector<128xf32>
      %20 = vector.multi_reduction <add>, %19, %cst_11 [0] : vector<8x128xf32> to vector<128xf32>
      %21 = vector.shape_cast %20 : vector<128xf32> to vector<1x128xf32>
      %cst_12 = arith.constant 4.8828125E-4 : f32
      %22 = vector.broadcast %cst_12 : f32 to vector<1x128xf32>
      %23 = arith.mulf %21, %22 : vector<1x128xf32>
      %c0_13 = arith.constant 0 : index
      %c0_14 = arith.constant 0 : index
      %24 = vector.load %arg4[%c0_13, %c0_14] : memref<1x128xf32, #tpu.memory_space<vmem>>, vector<1x128xf32>
      tpu.vector_store %arg4[%c0_13, %c0_14], %23 {strides = array<i32>} : memref<1x128xf32, #tpu.memory_space<vmem>>, vector<1x128xf32>,
    } else {
    }
    return
  }
  func.func @transform_0(%arg0: i32, %arg1: i32) -> (i32, i32) {
    %c1_i32 = arith.constant 1 : i32
    %0 = arith.muli %arg0, %c1_i32 : i32
    %1 = arith.addi %0, %arg1 : i32
    %c0_i32 = arith.constant 0 : i32
    %c0_i32_0 = arith.constant 0 : i32
    return %1, %c0_i32 : i32, i32
  }
  func.func @transform_1(%arg0: i32, %arg1: i32) -> (i32, i32) {
    %c1_i32 = arith.constant 1 : i32
    %0 = arith.muli %arg0, %c1_i32 : i32
    %1 = arith.addi %0, %arg1 : i32
    %c0_i32 = arith.constant 0 : i32
    %c0_i32_0 = arith.constant 0 : i32
    return %1, %c0_i32 : i32, i32
  }
  func.func @transform_2(%arg0: i32, %arg1: i32) -> (i32, i32) {
    %c0_i32 = arith.constant 0 : i32
    %c0_i32_0 = arith.constant 0 : i32
    return %c0_i32, %arg0 : i32, i32
  }
}

</mosaic_0001>

<bundles_post_ra>
// kernel: tpu_custom_call.1
= control target key start
LH: loop header
LB: loop body
LE: loop exit
PB: predicated region body
PF: predicated region fallthrough
CT: control target
= control target key end

     0   :  { %7 = vsyncpa [#allocation4], 0  ;;  %s230_s0 = inlined_call_operand.hbm [shape: f32[16,128], index: 0, kind: input, shape index: {}]   ;;  %s231_s1 = inlined_call_operand.hbm [shape: f32[16,128], index: 1, kind: input, shape index: {}]   ;;  %s232_s2 = inlined_call_operand.hbm [shape: f32[1,128], index: 2, kind: output, shape index: {}]  }
   0x1   :  { %8 = vsyncpa [#allocation7], 0 }
   0x2   :  { %9 = vsyncpa [#allocation5], 0  ;;  %s174_s9 = smov [#allocation3]   ;;  %s102_s13 = scalar_lea.hbm %s230_s0, 256 }
   0x3   :  { %s19_s10 = sshll.u32 %s174_s9, 4  ;;  %p103_p0 = scmp.ne.s32.totalorder %s230_s0, %s102_s13  ;;  %s20_s10 = int_to_ptr.vmem [resolvable:$true] %s19_s10 }
   0x4   :  { %p106_p1 = scmp.lt.u32.totalorder %s102_s13, %s230_s0 }
   0x6   :  { %p108_p2 = pnand %p106_p1, %p103_p0 }
   0x8   :  { %111 = shalt.err (!%p108_p2)
}
   0x9   :  { %s112_s18 = scalar_lea.vmem %s20_s10, 256  ;;  %p117_p4 = scmp.lt.s32.totalorder %s20_s10, %s20_s10 }
   0xa   :  { %p113_p3 = scmp.ne.s32.totalorder %s20_s10, %s112_s18  ;;  %p118_p5 = scmp.lt.s32.totalorder %s112_s18, %s112_s18 }
   0xc   :  { %p119_p6 = por %p118_p5, %p117_p4 }
   0xe   :  { %p120_p7 = pnand %p119_p6, %p113_p3 }
  0x10   :  { %123 = shalt.err (!%p120_p7)
}
  0x11   :  { %s175_s19 = smov 128   ;;  %s176_s20 = smov 8  }
  0x12   :  { %25 = dma.hbm_to_vmem [thread:$0]  %s230_s0, 256, %s20_s10, [#allocation4], %s175_s19, %s175_s19, %s176_s20  }
  0x13   :  { %s177_s23 = smov [#allocation6]   ;;  %s124_s27 = scalar_lea.hbm %s231_s1, 256 }
  0x14   :  { %s35_s24 = sshll.u32 %s177_s23, 4  ;;  %p125_p8 = scmp.ne.s32.totalorder %s231_s1, %s124_s27  ;;  %s36_s24 = int_to_ptr.vmem [resolvable:$true] %s35_s24 }
  0x15   :  { %p128_p9 = scmp.lt.u32.totalorder %s124_s27, %s231_s1 }
  0x17   :  { %p130_p10 = pnand %p128_p9, %p125_p8 }
  0x19   :  { %133 = shalt.err (!%p130_p10)
}
  0x1a   :  { %s134_s4 = scalar_lea.vmem %s36_s24, 256  ;;  %p139_p12 = scmp.lt.s32.totalorder %s36_s24, %s36_s24 }
  0x1b   :  { %p135_p11 = scmp.ne.s32.totalorder %s36_s24, %s134_s4  ;;  %p140_p13 = scmp.lt.s32.totalorder %s134_s4, %s134_s4 }
  0x1d   :  { %p141_p0 = por %p140_p13, %p139_p12 }
  0x1f   :  { %p142_p1 = pnand %p141_p0, %p135_p11 }
  0x21   :  { %145 = shalt.err (!%p142_p1)
}
  0x22   :  { %41 = dma.hbm_to_vmem [thread:$0]  %s231_s1, 256, %s36_s24, [#allocation7], %s175_s19, %s175_s19, %s176_s20  }
  0x23   :  { %168 = dma.done.wait [#allocation4], 256  }
  0x24   :  { %169 = vsyncadd [#allocation4], 4294967040 }
  0x25   :  { %170 = dma.done.wait [#allocation7], 256  }
  0x26   :  { %171 = vsyncadd [#allocation7], 4294967040  ;;  %v57_v0 = vld [vmem:[#allocation3] sm:$0xff]  ;;  %v58_v1 = vld [vmem:[#allocation3 + $0x8] sm:$0xff]  ;;  %s178_s6 = smov [#allocation8]  }
  0x27   :  { %v59_v2 = vld [vmem:[#allocation6] sm:$0xff]  ;;  %v60_v3 = vld [vmem:[#allocation6 + $0x8] sm:$0xff]  ;;  %s87_s1 = sshll.u32 %s178_s6, 4  ;;  %s88_s1 = int_to_ptr.vmem [resolvable:$true] %s87_s1 }
  0x28   :  { %v61_v4 = vsub.f32 %v57_v0, %v59_v2  ;;  %v62_v5 = vsub.f32 %v58_v1, %v60_v3  ;;  %s146_s7 = scalar_lea.vmem %s88_s1, 16  ;;  %s150_s8 = scalar_lea.vmem %s88_s1, 32 }
  0x29   :  { %p147_p2 = scmp.ne.s32.totalorder %s88_s1, %s146_s7  ;;  %p151_p3 = scmp.lt.s32.totalorder %s88_s1, %s88_s1 }
  0x2a   :  { %v63_v6 = vmul.f32 %v61_v4, %v61_v4  ;;  %v64_v7 = vmul.f32 %v62_v5, %v62_v5  ;;  %p152_p4 = scmp.lt.s32.totalorder %s150_s8, %s146_s7 }
  0x2c   :  { %v66_v8 = vadd.f32 %v64_v7, %v63_v6  ;;  %p153_p5 = por %p152_p4, %p151_p3 }
  0x2e   :  { %v73_v9 = vrot.slane %v66_v8, 4  ;;  %p154_p6 = pnand %p153_p5, %p147_p2 }
  0x30   :  { %v74_v10 = vadd.f32 %v73_v9, %v66_v8 }
  0x32   :  { %v75_v11 = vrot.slane %v74_v10, 2 }
  0x34   :  { %v76_v12 = vadd.f32 %v75_v11, %v74_v10 }
  0x36   :  { %v77_v13 = vrot.slane %v76_v12, 1 }
  0x38   :  { %v78_v14 = vadd.f32 %v77_v13, %v76_v12 }
  0x3a   :  { %v79_v15 = vmul.f32 0.00048828125, %v78_v14 }
  0x3c   :  { %80 = vst [vmem:[#allocation8] sm:$0x1] %v79_v15 }
  0x3d   :  { %157 = shalt.err (!%p154_p6)
}
  0x3e   :  { %s158_s11 = scalar_lea.hbm %s232_s2, 16 }
  0x3f   :  { %p159_p7 = scmp.ne.s32.totalorder %s232_s2, %s158_s11  ;;  %p162_p8 = scmp.lt.u32.totalorder %s158_s11, %s232_s2 }
  0x41   :  { %p164_p9 = pnand %p162_p8, %p159_p7 }
  0x43   :  { %167 = shalt.err (!%p164_p9)
}
  0x44   :  { %90 = dma.vmem_to_hbm [thread:$0]  %s88_s1, 16, %s232_s2, [#allocation5]  }
  0x45   :  { %172 = dma.done.wait [#allocation5], 16  }
  0x46   :  { %173 = vsyncadd [#allocation5], 4294967280 }
  0x47   :  { %94 = vsyncpa [#allocation4], 1 }
  0x48   :  { %95 = vsyncpa [#allocation7], 1 }
  0x49   :  { %96 = vsyncpa [#allocation5], 1 }

</bundles_post_ra>
